<compile_context>
chip_gen: v6e
topology: v6e:2x2x1
jax: 0.10.0
libtpu: 0.0.40
codegen_flags: <defaults>
</compile_context>

<pallas_src>
import functools
import math

import jax
import jax.numpy as jnp
from jax.experimental import pallas as pl
from jax.experimental.pallas import tpu as pltpu

_LANE = 128
_EPS = 1e-5


def _round_up(v, m):
    return ((v + m - 1) // m) * m


def _pad2(a, rows, cols):
    return jnp.pad(a, ((0, rows - a.shape[0]), (0, cols - a.shape[1])))


def _mlp_kernel(x_ref, w1_ref, w2_ref, vec_ref, alpha_ref, o_ref, *, hid_p, out_p):
    n = x_ref.shape[0]          # true batch size (never row-padded)
    inv_n = 1.0 / n

    # ---- Linear 1 (no bias: it cancels exactly under training-mode BatchNorm) ----
    h = jnp.dot(x_ref[...], w1_ref[...], preferred_element_type=jnp.float32)  # (N, Hp) f32

    # ---- BatchNorm1d (training-mode batch stats) via sum / sum-of-squares ----
    mean = jnp.sum(h, axis=0, keepdims=True) * inv_n                  # (1, Hp)
    ex2 = jnp.sum(h * h, axis=0, keepdims=True) * inv_n               # (1, Hp)
    var = jnp.maximum(ex2 - mean * mean, 0.0)                         # biased variance, >= 0
    gamma = vec_ref[0:1, :hid_p]                                      # 0 on padded lanes
    beta = vec_ref[1:2, :hid_p]
    scale = gamma * jax.lax.rsqrt(var + _EPS)                         # (1, Hp)
    shift = beta - mean * scale
    h_bn = h * scale + shift                                          # 1 mul + 1 add / elem

    # ---- PReLU: shared slope read once from SMEM (scalar path) ----
    a = alpha_ref[0]
    h_act = jnp.where(h_bn > 0, h_bn, a * h_bn)

    # ---- Linear 2: bf16 operands on the MXU, f32 accumulation ----
    b2 = vec_ref[2:3, :out_p]
    out = jnp.dot(h_act.astype(jnp.bfloat16), w2_ref[...],
                  preferred_element_type=jnp.float32) + b2
    o_ref[...] = out.astype(o_ref.dtype)


def build_mlp_forward(n, inp, hidden, outp, w1, gamma, beta, alpha, w2, b2):
    """Pads / casts the parameters ONCE and returns a jitted forward(x)."""
    inp_p = _round_up(inp, _LANE)
    hid_p = _round_up(hidden, _LANE)
    out_p = _round_up(outp, _LANE)
    vec_p = max(hid_p, out_p)

    # Zero padding invariants (load-bearing — do not change to ones):
    #   gamma padded with 0  -> scale = 0 on padded hidden lanes,
    #   beta/b2 padded with 0 and zero w2 rows/cols -> padded output lanes stay 0.
    w1_p = _pad2(w1, inp_p, hid_p).astype(jnp.bfloat16)
    w2_p = _pad2(w2, hid_p, out_p).astype(jnp.bfloat16)
    vec = jnp.concatenate([_pad2(gamma, 1, vec_p),
                           _pad2(beta, 1, vec_p),
                           _pad2(b2, 1, vec_p)], axis=0)              # (3, vec_p) f32
    alpha_s = jnp.reshape(alpha, (1,)).astype(jnp.float32)

    kernel = functools.partial(_mlp_kernel, hid_p=hid_p, out_p=out_p)
    vmem = pl.BlockSpec(memory_space=pltpu.MemorySpace.VMEM)
    call = pl.pallas_call(
        kernel,
        out_shape=jax.ShapeDtypeStruct((n, out_p), jnp.float32),
        in_specs=[vmem, vmem, vmem, vmem,
                  pl.BlockSpec(memory_space=pltpu.MemorySpace.SMEM)],  # PReLU slope scalar
        out_specs=vmem,
        compiler_params=pltpu.CompilerParams(vmem_limit_bytes=32 * 1024 * 1024),
    )

    @jax.jit
    def forward(x):
        # Only per-call prep: pad + cast x (fused under jit); params are closed over.
        x_p = _pad2(x, n, inp_p).astype(jnp.bfloat16)
        out_padded = call(x_p, w1_p, w2_p, vec, alpha_s)
        # Padded output columns are exact zeros; slice back to the real width.
        return out_padded[:, :outp]

    return forward


def init_params(key, inp_size, outp_size, hidden_size):
    """Deterministic init mirroring PyTorch defaults (uniform +-1/sqrt(fan_in))."""
    k1, k2, k3, k4 = jax.random.split(key, 4)
    bound1 = 1.0 / math.sqrt(inp_size)
    bound2 = 1.0 / math.sqrt(hidden_size)
    # Weights stored as (in_features, out_features), i.e. transposed vs torch's (out, in).
    w1 = jax.random.uniform(k1, (inp_size, hidden_size), jnp.float32, -bound1, bound1)
    b1 = jax.random.uniform(k2, (1, hidden_size), jnp.float32, -bound1, bound1)
    gamma = jnp.ones((1, hidden_size), jnp.float32)    # BatchNorm1d weight
    beta = jnp.zeros((1, hidden_size), jnp.float32)    # BatchNorm1d bias
    alpha = jnp.full((1,), 0.25, jnp.float32)           # PReLU shared slope
    w2 = jax.random.uniform(k3, (hidden_size, outp_size), jnp.float32, -bound2, bound2)
    b2 = jax.random.uniform(k4, (1, outp_size), jnp.float32, -bound2, bound2)
    return w1, b1, gamma, beta, alpha, w2, b2


if __name__ == "__main__":
    inp_size, outp_size, hidden_size = 16, 8, 32
    batch = 8

    key = jax.random.PRNGKey(0)
    kx, kp = jax.random.split(key)
    x = jax.random.normal(kx, (batch, inp_size), jnp.float32)
    w1, b1, gamma, beta, alpha, w2, b2 = init_params(kp, inp_size, outp_size, hidden_size)

    forward = build_mlp_forward(batch, inp_size, hidden_size, outp_size,
                                w1, gamma, beta, alpha, w2, b2)
    out = forward(x)
    jax.block_until_ready(out)

    # Reference in plain JAX with the same bf16 matmul operands / f32 elementwise math.
    # It KEEPS the Linear-1 bias, demonstrating that dropping it in the kernel is
    # mathematically equivalent under training-mode BatchNorm.
    h = jnp.dot(x.astype(jnp.bfloat16), w1.astype(jnp.bfloat16),
                preferred_element_type=jnp.float32) + b1
    mean = h.mean(axis=0, keepdims=True)
    var = ((h - mean) ** 2).mean(axis=0, keepdims=True)
    h_bn = (h - mean) * jax.lax.rsqrt(var + _EPS) * gamma + beta
    h_act = jnp.where(h_bn > 0, h_bn, alpha[0] * h_bn)
    ref = jnp.dot(h_act.astype(jnp.bfloat16), w2.astype(jnp.bfloat16),
                  preferred_element_type=jnp.float32) + b2

    assert out.shape == (batch, outp_size)
    assert jnp.allclose(out, ref, atol=1e-2, rtol=1e-2), "kernel mismatch vs reference"
    print("KERNEL_OK")
</pallas_src>

<mosaic_0001>
module attributes {stable_mosaic.version = 11 : i64} {
  func.func @_mlp_kernel(%arg0: memref<8x128xbf16, #tpu.memory_space<vmem>>, %arg1: memref<128x128xbf16, #tpu.memory_space<vmem>>, %arg2: memref<128x128xbf16, #tpu.memory_space<vmem>>, %arg3: memref<3x128xf32, #tpu.memory_space<vmem>>, %arg4: memref<1xf32, #tpu.memory_space<smem>>, %arg5: memref<8x128xf32, #tpu.memory_space<vmem>>) attributes {dimension_semantics = [], scalar_prefetch = 0 : i64, scratch_operands = 0 : i64, tpu.core_type = #tpu.core_type<tc>} {
    %c0 = arith.constant 0 : index
    %c0_0 = arith.constant 0 : index
    %0 = vector.load %arg0[%c0, %c0_0] : memref<8x128xbf16, #tpu.memory_space<vmem>>, vector<8x128xbf16>
    %c0_1 = arith.constant 0 : index
    %c0_2 = arith.constant 0 : index
    %1 = vector.load %arg1[%c0_1, %c0_2] : memref<128x128xbf16, #tpu.memory_space<vmem>>, vector<128x128xbf16>
    %cst = arith.constant dense<0.000000e+00> : vector<8x128xf32>
    %2 = tpu.matmul %0, %1, %cst {dimension_numbers = #tpu.dot_dimension_numbers<[1], [0], [0], [1], [0, 0, 1, 1], [], []>} : vector<8x128xbf16>, vector<128x128xbf16>, vector<8x128xf32> -> vector<8x128xf32>
    %cst_3 = arith.constant dense<0.000000e+00> : vector<128xf32>
    %3 = vector.multi_reduction <add>, %2, %cst_3 [0] : vector<8x128xf32> to vector<128xf32>
    %4 = vector.shape_cast %3 : vector<128xf32> to vector<1x128xf32>
    %cst_4 = arith.constant 1.250000e-01 : f32
    %5 = vector.broadcast %cst_4 : f32 to vector<1x128xf32>
    %6 = arith.mulf %4, %5 : vector<1x128xf32>
    %7 = arith.mulf %2, %2 : vector<8x128xf32>
    %cst_5 = arith.constant dense<0.000000e+00> : vector<128xf32>
    %8 = vector.multi_reduction <add>, %7, %cst_5 [0] : vector<8x128xf32> to vector<128xf32>
    %9 = vector.shape_cast %8 : vector<128xf32> to vector<1x128xf32>
    %cst_6 = arith.constant 1.250000e-01 : f32
    %10 = vector.broadcast %cst_6 : f32 to vector<1x128xf32>
    %11 = arith.mulf %9, %10 : vector<1x128xf32>
    %12 = arith.mulf %6, %6 : vector<1x128xf32>
    %13 = arith.subf %11, %12 : vector<1x128xf32>
    %cst_7 = arith.constant 0.000000e+00 : f32
    %14 = vector.broadcast %cst_7 : f32 to vector<1x128xf32>
    %15 = arith.maximumf %13, %14 : vector<1x128xf32>
    %c0_8 = arith.constant 0 : index
    %c0_9 = arith.constant 0 : index
    %16 = vector.load %arg3[%c0_8, %c0_9] : memref<3x128xf32, #tpu.memory_space<vmem>>, vector<1x128xf32>
    %c1 = arith.constant 1 : index
    %c0_10 = arith.constant 0 : index
    %17 = vector.load %arg3[%c1, %c0_10] : memref<3x128xf32, #tpu.memory_space<vmem>>, vector<1x128xf32>
    %cst_11 = arith.constant 9.99999974E-6 : f32
    %18 = vector.broadcast %cst_11 : f32 to vector<1x128xf32>
    %19 = arith.addf %15, %18 : vector<1x128xf32>
    %20 = math.rsqrt %19 : vector<1x128xf32>
    %21 = arith.mulf %16, %20 : vector<1x128xf32>
    %22 = arith.mulf %6, %21 : vector<1x128xf32>
    %23 = arith.subf %17, %22 : vector<1x128xf32>
    %24 = vector.broadcast %21 : vector<1x128xf32> to vector<8x128xf32>
    %25 = arith.mulf %2, %24 : vector<8x128xf32>
    %26 = vector.broadcast %23 : vector<1x128xf32> to vector<8x128xf32>
    %27 = arith.addf %25, %26 : vector<8x128xf32>
    %c0_12 = arith.constant 0 : index
    %28 = memref.load %arg4[%c0_12] : memref<1xf32, #tpu.memory_space<smem>>
    %cst_13 = arith.constant 0.000000e+00 : f32
    %29 = vector.broadcast %cst_13 : f32 to vector<8x128xf32>
    %30 = arith.cmpf ogt, %27, %29 : vector<8x128xf32>
    %31 = vector.broadcast %28 : f32 to vector<8x128xf32>
    %32 = arith.mulf %31, %27 : vector<8x128xf32>
    %33 = arith.select %30, %27, %32 : vector<8x128xi1>, vector<8x128xf32>
    %c2 = arith.constant 2 : index
    %c0_14 = arith.constant 0 : index
    %34 = vector.load %arg3[%c2, %c0_14] : memref<3x128xf32, #tpu.memory_space<vmem>>, vector<1x128xf32>
    %35 = arith.truncf %33 : vector<8x128xf32> to vector<8x128xbf16>
    %c0_15 = arith.constant 0 : index
    %c0_16 = arith.constant 0 : index
    %36 = vector.load %arg2[%c0_15, %c0_16] : memref<128x128xbf16, #tpu.memory_space<vmem>>, vector<128x128xbf16>
    %cst_17 = arith.constant dense<0.000000e+00> : vector<8x128xf32>
    %37 = tpu.matmul %35, %36, %cst_17 {dimension_numbers = #tpu.dot_dimension_numbers<[1], [0], [0], [1], [0, 0, 1, 1], [], []>} : vector<8x128xbf16>, vector<128x128xbf16>, vector<8x128xf32> -> vector<8x128xf32>
    %38 = vector.broadcast %34 : vector<1x128xf32> to vector<8x128xf32>
    %39 = arith.addf %37, %38 : vector<8x128xf32>
    %c0_18 = arith.constant 0 : index
    %c0_19 = arith.constant 0 : index
    %40 = vector.load %arg5[%c0_18, %c0_19] : memref<8x128xf32, #tpu.memory_space<vmem>>, vector<8x128xf32>
    tpu.vector_store %arg5[%c0_18, %c0_19], %39 {strides = array<i32>} : memref<8x128xf32, #tpu.memory_space<vmem>>, vector<8x128xf32>,
    return
  }
}

</mosaic_0001>

<bundles_post_ra>
// kernel: forward.1
= control target key start
LH: loop header
LB: loop body
LE: loop exit
PB: predicated region body
PF: predicated region fallthrough
CT: control target
= control target key end

     0   :  { %11 = vsyncpa [#allocation4], 0  ;;  %s550_s0 = inlined_call_operand.vmem [shape: bf16[8,128], index: 0, kind: input, shape index: {}]   ;;  %s551_s1 = inlined_call_operand.hbm [shape: bf16[128,128], index: 1, kind: input, shape index: {}]   ;;  %s552_s2 = inlined_call_operand.hbm [shape: bf16[128,128], index: 2, kind: input, shape index: {}]   ;;  %s553_s3 = inlined_call_operand.vmem [shape: f32[3,128], index: 3, kind: input, shape index: {}]   ;;  %s554_s4 = inlined_call_operand.<no memory space> [shape: f32[1], index: 4, kind: input, shape index: {}]   ;;  %s555_s5 = inlined_call_operand.hbm [shape: f32[8,128], index: 5, kind: output, shape index: {}]  }
   0x1   :  { %12 = vsyncpa [#allocation7], 0 }
   0x2   :  { %13 = vsyncpa [#allocation5], 0  ;;  %s489_s18 = smov [#allocation3]  }
   0x3   :  { %s21_s19 = sshll.u32 %s489_s18, 4  ;;  %s22_s19 = int_to_ptr.vmem [resolvable:$true] %s21_s19 }
   0x4   :  { %s431_s20 = scalar_lea.vmem %s22_s19, 1024  ;;  %p436_p1 = scmp.lt.s32.totalorder %s22_s19, %s22_s19 }
   0x5   :  { %p432_p0 = scmp.ne.s32.totalorder %s22_s19, %s431_s20  ;;  %p437_p2 = scmp.lt.s32.totalorder %s431_s20, %s431_s20 }
   0x7   :  { %p438_p3 = por %p437_p2, %p436_p1 }
   0x9   :  { %p439_p4 = pnand %p438_p3, %p432_p0 }
   0xb   :  { %442 = shalt.err (!%p439_p4)
}
   0xc   :  { %s490_s21 = smov 64   ;;  %s491_s22 = smov 4  }
   0xd   :  { %27 = dma.hbm_to_vmem [thread:$0]  %s551_s1, 1024, %s22_s19, [#allocation4], %s490_s21, %s490_s21, %s491_s22  }
   0xe   :  { %s492_s25 = smov [#allocation6]  }
   0xf   :  { %s33_s26 = sshll.u32 %s492_s25, 4  ;;  %s34_s26 = int_to_ptr.vmem [resolvable:$true] %s33_s26 }
  0x10   :  { %s451_s27 = scalar_lea.vmem %s34_s26, 1024  ;;  %p456_p6 = scmp.lt.s32.totalorder %s34_s26, %s34_s26 }
  0x11   :  { %p452_p5 = scmp.ne.s32.totalorder %s34_s26, %s451_s27  ;;  %p457_p7 = scmp.lt.s32.totalorder %s451_s27, %s451_s27 }
  0x13   :  { %p458_p8 = por %p457_p7, %p456_p6 }
  0x15   :  { %p459_p9 = pnand %p458_p8, %p452_p5 }
  0x17   :  { %462 = shalt.err (!%p459_p9)
}
  0x18   :  { %39 = dma.hbm_to_vmem [thread:$0]  %s552_s2, 1024, %s34_s26, [#allocation7], %s490_s21, %s490_s21, %s491_s22  }
  0x19   :  { %483 = dma.done.wait [#allocation4], 1024  }
  0x1a   :  { %484 = vsyncadd [#allocation4], 4294966272 }
  0x1b   :  { %485 = dma.done.wait [#allocation7], 1024  }
  0x1c   :  { %486 = vsyncadd [#allocation7], 4294966272  ;;  %v493_v0 = vmov 0.0   ;;  %vm494_vm0 = vmmov 0   ;;  %v405_v1 = vld [vmem:[#allocation3 + $0x38] sm:$0xff]   ;;  %v406_v2 = vld [vmem:[#allocation3 + $0x30] sm:$0xff]   ;;  %v181_v41 = vlaneseq  ;;  %v193_v53 = vstv %s554_s4 }
  0x1d   :  { %358 = vmatprep.subr.bf16.mxu0 %v493_v0  ;;  %374 = vmatprep.mubr.msk.bf16.mxu0 %vm494_vm0, %v493_v0  ;;  %v407_v3 = vld [vmem:[#allocation3 + $0x28] sm:$0xff]   ;;  %v408_v4 = vld [vmem:[#allocation3 + $0x20] sm:$0xff]   ;;  %v409_v5 = vld [vmem:[#allocation3 + $0x18] sm:$0xff]   ;;  %s495_s12 = smov [#allocation8]  }
  0x1e   :  { %378 = vmatprep.subr.bf16.mxu1 %v493_v0  ;;  %394 = vmatprep.mubr.msk.bf16.mxu1 %vm494_vm0, %v493_v0  ;;  %v410_v6 = vld [vmem:[#allocation3 + $0x10] sm:$0xff]   ;;  %v411_v7 = vld [vmem:[#allocation3 + $0x8] sm:$0xff]   ;;  %v412_v8 = vld [vmem:[#allocation3] sm:$0xff]   ;;  %v182_v42 = vshrl.u32 %v181_v41, 7  ;;  %s313_s13 = sshll.u32 %s495_s12, 4  ;;  %s314_s13 = int_to_ptr.vmem [resolvable:$true] %s313_s13 }
  0x1f   :  { %359 = vmatpush3.bf16.msra.mxu0 %v405_v1  ;;  %v51_v9 = vld [vmem:[%s550_s0] sm:$0xf]  ;;  %v413_v10 = vld [vmem:[#allocation6 + $0x38] sm:$0xff]   ;;  %v414_v11 = vld [vmem:[#allocation6 + $0x30] sm:$0xff]   ;;  %s463_s14 = scalar_lea.vmem %s314_s13, 128  ;;  %p468_p11 = scmp.lt.s32.totalorder %s314_s13, %s314_s13 }
  0x20   :  { %360 = vmatprep.subr.bf16.mxu0 %v493_v0  ;;  %379 = vmatpush3.bf16.msra.mxu1 %v413_v10  ;;  %v415_v12 = vld [vmem:[#allocation6 + $0x28] sm:$0xff]   ;;  %v416_v13 = vld [vmem:[#allocation6 + $0x20] sm:$0xff]   ;;  %v417_v14 = vld [vmem:[#allocation6 + $0x18] sm:$0xff]   ;;  %v183_v44 = vsub.s32 0, %v182_v42  ;;  %p464_p10 = scmp.ne.s32.totalorder %s314_s13, %s463_s14  ;;  %p469_p12 = scmp.lt.s32.totalorder %s463_s14, %s463_s14 }
  0x21   :  { %380 = vmatprep.subr.bf16.mxu1 %v493_v0  ;;  %v418_v15 = vld [vmem:[#allocation6 + $0x10] sm:$0xff]   ;;  %v419_v16 = vld [vmem:[#allocation6 + $0x8] sm:$0xff]   ;;  %v420_v17 = vld [vmem:[#allocation6] sm:$0xff]  }
  0x22   :  { %v174_v43 = vld [vmem:[%s553_s3] sm:$0x1]  ;;  %v175_v47 = vld [vmem:[%s553_s3 + $0x1] sm:$0x1]  ;;  %v331_v58 = vld [vmem:[%s553_s3 + $0x2] ss:$0 sm:$0xff]  ;;  %p470_p13 = por %p469_p12, %p468_p11 }
  0x23   :  { %361 = vmatpush3.bf16.msra.mxu0 %v406_v2 }
  0x24   :  { %362 = vmatprep.subr.bf16.mxu0 %v493_v0  ;;  %381 = vmatpush3.bf16.msra.mxu1 %v414_v11  ;;  %p471_p0 = pnand %p470_p13, %p464_p10 }
  0x25   :  { %382 = vmatprep.subr.bf16.mxu1 %v493_v0 }
  0x27   :  { %363 = vmatpush3.bf16.msra.mxu0 %v407_v3 }
  0x28   :  { %364 = vmatprep.subr.bf16.mxu0 %v493_v0  ;;  %383 = vmatpush3.bf16.msra.mxu1 %v415_v12 }
  0x29   :  { %384 = vmatprep.subr.bf16.mxu1 %v493_v0 }
  0x2b   :  { %365 = vmatpush3.bf16.msra.mxu0 %v408_v4 }
  0x2c   :  { %366 = vmatprep.subr.bf16.mxu0 %v493_v0  ;;  %385 = vmatpush3.bf16.msra.mxu1 %v416_v13 }
  0x2d   :  { %386 = vmatprep.subr.bf16.mxu1 %v493_v0 }
  0x2f   :  { %367 = vmatpush3.bf16.msra.mxu0 %v409_v5 }
  0x30   :  { %368 = vmatprep.subr.bf16.mxu0 %v493_v0  ;;  %387 = vmatpush3.bf16.msra.mxu1 %v417_v14 }
  0x31   :  { %388 = vmatprep.subr.bf16.mxu1 %v493_v0 }
  0x33   :  { %369 = vmatpush3.bf16.msra.mxu0 %v410_v6 }
  0x34   :  { %370 = vmatprep.subr.bf16.mxu0 %v493_v0  ;;  %389 = vmatpush3.bf16.msra.mxu1 %v418_v15 }
  0x35   :  { %390 = vmatprep.subr.bf16.mxu1 %v493_v0 }
  0x37   :  { %371 = vmatpush3.bf16.msra.mxu0 %v411_v7 }
  0x38   :  { %372 = vmatprep.subr.bf16.mxu0 %v493_v0  ;;  %391 = vmatpush3.bf16.msra.mxu1 %v419_v16 }
  0x39   :  { %392 = vmatprep.subr.bf16.mxu1 %v493_v0 }
  0x3b   :  { %373 = vmatpush3.bf16.msra.mxu0 %v412_v8 }
  0x3c   :  { %393 = vmatpush3.bf16.msra.mxu1 %v420_v17 }
  0x3e   :  { %375 = vmatmul.mubr.bf16.vlgmr.msra.gmra.mxu0 %v51_v9 }
  0xfe   :  { %v150_v18 = vpop.f32.mrf.mxu0 }
  0xff   :  { %v156_v19 = vrot.slane %v150_v18, 4  ;;  %v163_v20 = vmul.f32 %v150_v18, %v150_v18 }
 0x100   :  { %v376_v21 = vpop.f32.mrf.mxu0 }
 0x101   :  { %v157_v22 = vadd.f32 %v156_v19, %v150_v18  ;;  %v164_v23 = vrot.slane %v163_v20, 4 }
 0x102   :  { %v153_v24 = vpop.f32.mrf.mxu0 }
 0x103   :  { %v158_v25 = vrot.slane %v157_v22, 2  ;;  %v165_v26 = vadd.f32 %v164_v23, %v163_v20 }
 0x104   :  { %v377_v27 = vpop.f32.mrf.mxu0 }
 0x105   :  { %v159_v28 = vadd.f32 %v158_v25, %v157_v22  ;;  %v166_v29 = vrot.slane %v165_v26, 2 }
 0x107   :  { %v160_v30 = vrot.slane %v159_v28, 1  ;;  %v167_v31 = vadd.f32 %v166_v29, %v165_v26 }
 0x109   :  { %v161_v32 = vadd.f32 %v160_v30, %v159_v28  ;;  %v168_v33 = vrot.slane %v167_v31, 1 }
 0x10b   :  { %v162_v34 = vmul.f32 0.125, %v161_v32  ;;  %v169_v35 = vadd.f32 %v168_v33, %v167_v31 }
 0x10d   :  { %v170_v36 = vmul.f32 0.125, %v169_v35  ;;  %v171_v37 = vmul.f32 %v162_v34, %v162_v34 }
 0x10f   :  { %v172_v38 = vsub.f32 %v170_v36, %v171_v37 }
 0x111   :  { %v173_v39 = vmax.f32 %v172_v38, 0.0 }
 0x113   :  { %v176_v40 = vadd.f32 1e-05, %v173_v39 }
 0x115   :  { %421 = vrsqrt.f32 %v176_v40 }
 0x122   :  { %v422_v45 = vpop.eup %421 }
 0x123   :  { %v178_v46 = vmul.f32 %v422_v45, %v174_v43 }
 0x125   :  { %v179_v48 = vmul.f32 %v178_v46, %v162_v34  ;;  %v184_v49 = vrot.slane %v178_v46, %v183_v44 }
 0x127   :  { %v180_v50 = vsub.f32 %v175_v47, %v179_v48  ;;  %v185_v51 = vmul.f32 %v184_v49, %v150_v18 }
 0x129   :  { %v189_v52 = vrot.slane %v180_v50, %v183_v44 }
 0x12b   :  { %v190_v54 = vadd.f32 %v189_v52, %v185_v51 }
 0x12d   :  { %vm192_vm1 = vcmp.gt.f32.partialorder %v190_v54, 0.0  ;;  %v194_v55 = vmul.f32 %v193_v53, %v190_v54 }
 0x12f   :  { %v195_v56 = vsel %vm192_vm1, %v190_v54, %v194_v55 }
 0x130   :  { %v197_v57 = vpack.c.bf16 %v195_v56, %v195_v56 }
 0x132   :  { %395 = vmatmul.mubr.bf16.vlgmr.msra.gmra.mxu1 %v197_v57 }
 0x1f2   :  { %v300_v59 = vpop.f32.mrf.mxu1 }
 0x1f3   :  { %v301_v60 = vadd.f32 %v331_v58, %v300_v59 }
 0x1f4   :  { %v396_v61 = vpop.f32.mrf.mxu1 }
 0x1f5   :  { %306 = vst [vmem:[#allocation8] sm:$0xff] %v301_v60 }
 0x1f6   :  { %v303_v62 = vpop.f32.mrf.mxu1 }
 0x1f7   :  { %474 = shalt.err (!%p471_p0)
}
 0x1f8   :  { %316 = dma.vmem_to_hbm [thread:$0]  %s314_s13, 128, %s555_s5, [#allocation5]   ;;  %v397_v63 = vpop.f32.mrf.mxu1 }
 0x1f9   :  { %487 = dma.done.wait [#allocation5], 128  }
 0x1fa   :  { %488 = vsyncadd [#allocation5], 4294967168 }
 0x1fb   :  { %320 = vsyncpa [#allocation4], 1 }
 0x1fc   :  { %321 = vsyncpa [#allocation7], 1 }
 0x1fd   :  { %322 = vsyncpa [#allocation5], 1 }

</bundles_post_ra>
